<compile_context>
chip_gen: v7x
topology: tpu7x:2x2x1
jax: 0.10.0
libtpu: 0.0.40
codegen_flags: <defaults>
</compile_context>

<pallas_src>
import functools

import jax
import jax.numpy as jnp
from jax.experimental import pallas as pl
from jax.experimental.pallas import tpu as pltpu

BN_EPS = 1e-5


def projection_mlp_kernel(x_ref, w1_ref, scale_ref, shift_ref, w2_ref, b2_ref,
                          o_ref, *, compute_dtype):
    # Layer 1 (no bias -- BN with batch stats cancels it exactly). MXU in bf16,
    # accumulate in f32.
    y = jnp.dot(x_ref[...].astype(compute_dtype), w1_ref[...],
                preferred_element_type=jnp.float32)
    # BatchNorm folded to a single per-feature FMA (scale/shift precomputed), then ReLU.
    h = jnp.maximum(y * scale_ref[...] + shift_ref[...], 0.0)
    # Layer 3.
    o_ref[...] = (jnp.dot(h.astype(compute_dtype), w2_ref[...],
                          preferred_element_type=jnp.float32)
                  + b2_ref[...]).astype(o_ref.dtype)


def projection_mlp(x, w1, gamma, beta, w2, b2, *, tile_b=1024,
                   compute_dtype=jnp.bfloat16):
    """x: [B, in_dim]; w1: [in_dim, hidden]; w2: [hidden, out_dim] (pre-transposed).
    gamma/beta: [hidden] or [1, hidden]; b2: [out_dim] or [1, out_dim].
    Returns [B, out_dim] f32. Layer-1 bias is intentionally not an argument
    (training-mode BN cancels it)."""
    B, in_dim = x.shape
    hidden = w1.shape[1]
    out_dim = w2.shape[1]

    x32 = x.astype(jnp.float32)
    w1_32 = w1.astype(jnp.float32)

    # ---------- BN batch statistics, hoisted out of the kernel (tiny) ----------
    # mean_y = mean(x) @ w1 ; var_y = diag(w1^T C w1)/B with C the *centered* Gram
    # matrix -- avoids E[y^2]-E[y]^2 catastrophic cancellation. Biased variance,
    # matching PyTorch BatchNorm1d in training mode.
    mean_x = jnp.mean(x32, axis=0, keepdims=True)                          # [1, in_dim]
    xc = x32 - mean_x
    gram_c = jnp.dot(xc.T, xc, preferred_element_type=jnp.float32)         # [in_dim, in_dim]
    mean_y = jnp.dot(mean_x, w1_32, preferred_element_type=jnp.float32)    # [1, hidden]
    var_y = jnp.sum(jnp.dot(gram_c, w1_32, preferred_element_type=jnp.float32) * w1_32,
                    axis=0, keepdims=True) / B                             # [1, hidden]
    scale = gamma.reshape(1, hidden).astype(jnp.float32) * jax.lax.rsqrt(var_y + BN_EPS)
    shift = beta.reshape(1, hidden).astype(jnp.float32) - mean_y * scale

    # ---------- batch tiling ----------
    tile_b = int(min(tile_b, max(8, ((B + 7) // 8) * 8)))   # sublane multiple of 8
    nb = pl.cdiv(B, tile_b)
    b_pad = nb * tile_b
    if b_pad != B:
        # Padded rows produce well-defined (but unused) outputs; sliced off below.
        x32 = jnp.pad(x32, ((0, b_pad - B), (0, 0)))

    w1_c = w1_32.astype(compute_dtype)
    w2_c = w2.astype(compute_dtype)
    b2_f = b2.reshape(1, out_dim).astype(jnp.float32)

    # ---------- VMEM budget (double-buffered x/out, resident weights, temporaries) ----------
    bytes_c = jnp.dtype(compute_dtype).itemsize
    est = (2 * tile_b * in_dim * 4            # x tiles (double buffered, f32)
           + in_dim * hidden * bytes_c        # w1 (resident)
           + hidden * out_dim * bytes_c       # w2 (resident)
           + 2 * tile_b * out_dim * 4         # out tiles (double buffered, f32)
           + 3 * tile_b * hidden * 4          # y / h temporaries
           + 4 * 8 * max(hidden, out_dim) * 4)  # (1, N) params, sublane-padded
    vmem_limit = int(min(48 * 2**20, max(8 * 2**20, 2 * est)))   # 48 MiB cap: v7x-safe

    kernel = functools.partial(projection_mlp_kernel, compute_dtype=compute_dtype)

    grid_spec = pltpu.PrefetchScalarGridSpec(
        num_scalar_prefetch=0,
        grid=(nb,),
        in_specs=[
            pl.BlockSpec((tile_b, in_dim), lambda i: (i, 0)),    # x (tiled, pipelined)
            pl.BlockSpec((in_dim, hidden), lambda i: (0, 0)),    # w1 (resident)
            pl.BlockSpec((1, hidden), lambda i: (0, 0)),         # BN scale
            pl.BlockSpec((1, hidden), lambda i: (0, 0)),         # BN shift
            pl.BlockSpec((hidden, out_dim), lambda i: (0, 0)),   # w2 (resident)
            pl.BlockSpec((1, out_dim), lambda i: (0, 0)),        # b2
        ],
        out_specs=pl.BlockSpec((tile_b, out_dim), lambda i: (i, 0)),
    )

    out = pl.pallas_call(
        kernel,
        out_shape=jax.ShapeDtypeStruct((b_pad, out_dim), jnp.float32),
        grid_spec=grid_spec,
        compiler_params=pltpu.CompilerParams(
            # Single, fully independent batch axis -> megacore-sharded on v7x.
            dimension_semantics=("parallel",),
            vmem_limit_bytes=vmem_limit,
        ),
    )(x32, w1_c, scale, shift, w2_c, b2_f)

    return out[:B] if b_pad != B else out


def init_params(key, in_dim, out_dim=128):
    """Mirror nn.Linear defaults (uniform +-1/sqrt(fan_in)) and nn.BatchNorm1d defaults."""
    hidden = out_dim
    k1, k2, k3, k4 = jax.random.split(key, 4)
    lim1 = 1.0 / jnp.sqrt(in_dim)
    lim2 = 1.0 / jnp.sqrt(hidden)
    w1 = jax.random.uniform(k1, (in_dim, hidden), jnp.float32, -lim1, lim1)
    b1 = jax.random.uniform(k2, (1, hidden), jnp.float32, -lim1, lim1)
    gamma = jnp.ones((1, hidden), jnp.float32)
    beta = jnp.zeros((1, hidden), jnp.float32)
    w2 = jax.random.uniform(k3, (hidden, out_dim), jnp.float32, -lim2, lim2)
    b2 = jax.random.uniform(k4, (1, out_dim), jnp.float32, -lim2, lim2)
    return w1, b1, gamma, beta, w2, b2


def reference(x, w1, b1, gamma, beta, w2, b2):
    y = x @ w1 + b1                       # bias included here; BN cancels it
    mean = jnp.mean(y, axis=0, keepdims=True)
    var = jnp.mean((y - mean) ** 2, axis=0, keepdims=True)
    h = (y - mean) / jnp.sqrt(var + BN_EPS) * gamma + beta
    h = jnp.maximum(h, 0.0)
    return h @ w2 + b2


if __name__ == "__main__":
    key = jax.random.PRNGKey(0)
    k_x, k_p, k_x2 = jax.random.split(key, 3)

    in_dim, out_dim = 32, 128
    w1, b1, gamma, beta, w2, b2 = init_params(k_p, in_dim, out_dim)

    # --- small single-tile case: exact structure check on the f32 compute path ---
    B = 16
    x = jax.random.normal(k_x, (B, in_dim), jnp.float32)
    out_f32 = jax.block_until_ready(
        projection_mlp(x, w1, gamma, beta, w2, b2, compute_dtype=jnp.float32))
    ref = reference(x, w1, b1, gamma, beta, w2, b2)
    assert out_f32.shape == (B, out_dim)
    assert jnp.allclose(out_f32, ref, atol=5e-3, rtol=5e-3), \
        f"f32 max err {float(jnp.max(jnp.abs(out_f32 - ref)))}"

    # default (bf16 MXU) path on the same inputs: looser tolerance (bf16 operands)
    out_bf16 = jax.block_until_ready(projection_mlp(x, w1, gamma, beta, w2, b2))
    assert jnp.allclose(out_bf16, ref, atol=1e-1, rtol=1e-1), \
        f"bf16 max err {float(jnp.max(jnp.abs(out_bf16 - ref)))}"

    # --- multi-tile + ragged batch: exercises padding + tiled/parallel batch axis ---
    B2 = 300
    x2 = jax.random.normal(k_x2, (B2, in_dim), jnp.float32)
    out2 = jax.block_until_ready(
        projection_mlp(x2, w1, gamma, beta, w2, b2, tile_b=128))
    ref2 = reference(x2, w1, b1, gamma, beta, w2, b2)
    assert out2.shape == (B2, out_dim)
    assert jnp.allclose(out2, ref2, atol=1e-1, rtol=1e-1), \
        f"ragged bf16 max err {float(jnp.max(jnp.abs(out2 - ref2)))}"

    print("KERNEL_OK")
</pallas_src>

<mosaic_0001>
module attributes {stable_mosaic.version = 11 : i64} {
  func.func @projection_mlp_kernel(%arg0: i32, %arg1: memref<16x32xf32, #tpu.memory_space<vmem>>, %arg2: memref<32x128xf32, #tpu.memory_space<vmem>>, %arg3: memref<1x128xf32, #tpu.memory_space<vmem>>, %arg4: memref<1x128xf32, #tpu.memory_space<vmem>>, %arg5: memref<128x128xf32, #tpu.memory_space<vmem>>, %arg6: memref<1x128xf32, #tpu.memory_space<vmem>>, %arg7: memref<16x128xf32, #tpu.memory_space<vmem>>) attributes {dimension_semantics = [#tpu.dimension_semantics<parallel>], iteration_bounds = array<i64: 1>, scalar_prefetch = 0 : i64, scratch_operands = 0 : i64, tpu.core_type = #tpu.core_type<tc>, window_params = [{transform_indices = @transform_0, window_bounds = array<i64: 16, 32>}, {pipeline_mode = #tpu.pipeline_mode<synchronous>, transform_indices = @transform_1, window_bounds = array<i64: 32, 128>}, {pipeline_mode = #tpu.pipeline_mode<synchronous>, transform_indices = @transform_2, window_bounds = array<i64: 1, 128>}, {pipeline_mode = #tpu.pipeline_mode<synchronous>, transform_indices = @transform_3, window_bounds = array<i64: 1, 128>}, {pipeline_mode = #tpu.pipeline_mode<synchronous>, transform_indices = @transform_4, window_bounds = array<i64: 128, 128>}, {pipeline_mode = #tpu.pipeline_mode<synchronous>, transform_indices = @transform_5, window_bounds = array<i64: 1, 128>}, {transform_indices = @transform_6, window_bounds = array<i64: 16, 128>}]} {
    %c0 = arith.constant 0 : index
    %c0_0 = arith.constant 0 : index
    %0 = vector.load %arg1[%c0, %c0_0] : memref<16x32xf32, #tpu.memory_space<vmem>>, vector<16x32xf32>
    %c0_1 = arith.constant 0 : index
    %c0_2 = arith.constant 0 : index
    %1 = vector.load %arg2[%c0_1, %c0_2] : memref<32x128xf32, #tpu.memory_space<vmem>>, vector<32x128xf32>
    %cst = arith.constant dense<0.000000e+00> : vector<16x128xf32>
    %2 = tpu.matmul %0, %1, %cst {dimension_numbers = #tpu.dot_dimension_numbers<[1], [0], [0], [1], [0, 0, 1, 1], [], []>} : vector<16x32xf32>, vector<32x128xf32>, vector<16x128xf32> -> vector<16x128xf32>
    %c0_3 = arith.constant 0 : index
    %c0_4 = arith.constant 0 : index
    %3 = vector.load %arg3[%c0_3, %c0_4] : memref<1x128xf32, #tpu.memory_space<vmem>>, vector<1x128xf32>
    %4 = vector.broadcast %3 : vector<1x128xf32> to vector<16x128xf32>
    %5 = arith.mulf %2, %4 : vector<16x128xf32>
    %c0_5 = arith.constant 0 : index
    %c0_6 = arith.constant 0 : index
    %6 = vector.load %arg4[%c0_5, %c0_6] : memref<1x128xf32, #tpu.memory_space<vmem>>, vector<1x128xf32>
    %7 = vector.broadcast %6 : vector<1x128xf32> to vector<16x128xf32>
    %8 = arith.addf %5, %7 : vector<16x128xf32>
    %cst_7 = arith.constant 0.000000e+00 : f32
    %9 = vector.broadcast %cst_7 : f32 to vector<16x128xf32>
    %10 = arith.maximumf %8, %9 : vector<16x128xf32>
    %c0_8 = arith.constant 0 : index
    %c0_9 = arith.constant 0 : index
    %11 = vector.load %arg5[%c0_8, %c0_9] : memref<128x128xf32, #tpu.memory_space<vmem>>, vector<128x128xf32>
    %cst_10 = arith.constant dense<0.000000e+00> : vector<16x128xf32>
    %12 = tpu.matmul %10, %11, %cst_10 {dimension_numbers = #tpu.dot_dimension_numbers<[1], [0], [0], [1], [0, 0, 1, 1], [], []>} : vector<16x128xf32>, vector<128x128xf32>, vector<16x128xf32> -> vector<16x128xf32>
    %c0_11 = arith.constant 0 : index
    %c0_12 = arith.constant 0 : index
    %13 = vector.load %arg6[%c0_11, %c0_12] : memref<1x128xf32, #tpu.memory_space<vmem>>, vector<1x128xf32>
    %14 = vector.broadcast %13 : vector<1x128xf32> to vector<16x128xf32>
    %15 = arith.addf %12, %14 : vector<16x128xf32>
    %c0_13 = arith.constant 0 : index
    %c0_14 = arith.constant 0 : index
    %16 = vector.load %arg7[%c0_13, %c0_14] : memref<16x128xf32, #tpu.memory_space<vmem>>, vector<16x128xf32>
    tpu.vector_store %arg7[%c0_13, %c0_14], %15 {strides = array<i32>} : memref<16x128xf32, #tpu.memory_space<vmem>>, vector<16x128xf32>,
    return
  }
  func.func @transform_0(%arg0: i32) -> (i32, i32) {
    %c0_i32 = arith.constant 0 : i32
    %c0_i32_0 = arith.constant 0 : i32
    return %arg0, %c0_i32 : i32, i32
  }
  func.func @transform_1(%arg0: i32) -> (i32, i32) {
    %c0_i32 = arith.constant 0 : i32
    %c0_i32_0 = arith.constant 0 : i32
    %c0_i32_1 = arith.constant 0 : i32
    return %c0_i32, %c0_i32_0 : i32, i32
  }
  func.func @transform_2(%arg0: i32) -> (i32, i32) {
    %c0_i32 = arith.constant 0 : i32
    %c0_i32_0 = arith.constant 0 : i32
    %c0_i32_1 = arith.constant 0 : i32
    return %c0_i32, %c0_i32_0 : i32, i32
  }
  func.func @transform_3(%arg0: i32) -> (i32, i32) {
    %c0_i32 = arith.constant 0 : i32
    %c0_i32_0 = arith.constant 0 : i32
    %c0_i32_1 = arith.constant 0 : i32
    return %c0_i32, %c0_i32_0 : i32, i32
  }
  func.func @transform_4(%arg0: i32) -> (i32, i32) {
    %c0_i32 = arith.constant 0 : i32
    %c0_i32_0 = arith.constant 0 : i32
    %c0_i32_1 = arith.constant 0 : i32
    return %c0_i32, %c0_i32_0 : i32, i32
  }
  func.func @transform_5(%arg0: i32) -> (i32, i32) {
    %c0_i32 = arith.constant 0 : i32
    %c0_i32_0 = arith.constant 0 : i32
    %c0_i32_1 = arith.constant 0 : i32
    return %c0_i32, %c0_i32_0 : i32, i32
  }
  func.func @transform_6(%arg0: i32) -> (i32, i32) {
    %c0_i32 = arith.constant 0 : i32
    %c0_i32_0 = arith.constant 0 : i32
    return %arg0, %c0_i32 : i32, i32
  }
}

</mosaic_0001>

<bundles_post_ra>
// kernel: tpu_custom_call.1
= control target key start
LH: loop header
LB: loop body
LE: loop exit
PB: predicated region body
PF: predicated region fallthrough
CT: control target
= control target key end

     0   :  { %11 = vsyncpa [#allocation3], 0  ;;  %s625_s0 = inlined_call_operand.hbm [shape: f32[16,32], index: 0, kind: input, shape index: {}]   ;;  %s626_s1 = inlined_call_operand.hbm [shape: f32[32,128], index: 1, kind: input, shape index: {}]   ;;  %s627_s2 = inlined_call_operand.vmem [shape: f32[1,128], index: 2, kind: input, shape index: {}]   ;;  %s628_s3 = inlined_call_operand.vmem [shape: f32[1,128], index: 3, kind: input, shape index: {}]   ;;  %s629_s4 = inlined_call_operand.hbm [shape: f32[128,128], index: 4, kind: input, shape index: {}]   ;;  %s630_s5 = inlined_call_operand.vmem [shape: f32[1,128], index: 5, kind: input, shape index: {}]   ;;  %s631_s6 = inlined_call_operand.hbm [shape: f32[16,128], index: 6, kind: output, shape index: {}]  }
   0x1   :  { %12 = vsyncpa [#allocation6], 0 }
   0x2   :  { %13 = vsyncpa [#allocation4], 0  ;;  %s506_s21 = smov [#allocation5]   ;;  %s507_s23 = smov [#allocation2]  }
   0x3   :  { %s31_s22 = sshll.u32 %s506_s21, 4  ;;  %s19_s24 = sshll.u32 %s507_s23, 4  ;;  %s32_s22 = int_to_ptr.vmem [resolvable:$true] %s31_s22  ;;  %s547_s24 = int_to_ptr.vmem [resolvable:$true] %s19_s24 }
   0x4   :  { %s412_s27 = scalar_lea.hbm %s626_s1, 512 }
   0x5   :  { %p413_p0 = scmp.ne.s32.totalorder %s626_s1, %s412_s27  ;;  %p416_p1 = scmp.lt.u32.totalorder %s412_s27, %s626_s1 }
   0x7   :  { %p418_p2 = pnand %p416_p1, %p413_p0 }
   0x9   :  { %421 = shalt.err (!%p418_p2)
}
   0xa   :  { %s422_s8 = scalar_lea.vmem %s32_s22, 512  ;;  %p427_p4 = scmp.lt.s32.totalorder %s32_s22, %s32_s22 }
   0xb   :  { %p423_p3 = scmp.ne.s32.totalorder %s32_s22, %s422_s8  ;;  %p428_p5 = scmp.lt.s32.totalorder %s422_s8, %s422_s8 }
   0xd   :  { %p429_p6 = por %p428_p5, %p427_p4 }
   0xf   :  { %p430_p7 = pnand %p429_p6, %p423_p3 }
  0x11   :  { %433 = shalt.err (!%p430_p7)
}
  0x12   :  { %s508_s9 = smov 128   ;;  %s509_s10 = smov 8  }
  0x13   :  { %37 = dma.hbm_to_vmem [thread:$0]  %s626_s1, 512, %s32_s22, [#allocation6], %s508_s9, %s508_s9, %s509_s10  }
  0x14   :  { %s434_s15 = scalar_lea.hbm %s625_s0, 256 }
  0x15   :  { %p435_p8 = scmp.ne.s32.totalorder %s625_s0, %s434_s15  ;;  %p438_p9 = scmp.lt.u32.totalorder %s434_s15, %s625_s0 }
  0x17   :  { %p440_p10 = pnand %p438_p9, %p435_p8 }
  0x19   :  { %443 = shalt.err (!%p440_p10)
}
  0x1a   :  { %s444_s20 = scalar_lea.vmem %s547_s24, 256  ;;  %p449_p12 = scmp.lt.s32.totalorder %s547_s24, %s547_s24 }
  0x1b   :  { %p445_p11 = scmp.ne.s32.totalorder %s547_s24, %s444_s20  ;;  %p450_p13 = scmp.lt.s32.totalorder %s444_s20, %s444_s20 }
  0x1d   :  { %p451_p0 = por %p450_p13, %p449_p12 }
  0x1f   :  { %p452_p1 = pnand %p451_p0, %p445_p11 }
  0x21   :  { %455 = shalt.err (!%p452_p1)
}
  0x22   :  { %25 = dma.hbm_to_vmem [thread:$0]  %s625_s0, 256, %s547_s24, [#allocation3], %s508_s9, %s508_s9, %s509_s10  }
  0x23   :  { %s510_s22 = smov [#allocation7]   ;;  %s456_s27 = scalar_lea.hbm %s629_s4, 2048 }
  0x24   :  { %s47_s23 = sshll.u32 %s510_s22, 4  ;;  %p457_p2 = scmp.ne.s32.totalorder %s629_s4, %s456_s27  ;;  %s48_s23 = int_to_ptr.vmem [resolvable:$true] %s47_s23 }
  0x25   :  { %p460_p3 = scmp.lt.u32.totalorder %s456_s27, %s629_s4 }
  0x27   :  { %p462_p4 = pnand %p460_p3, %p457_p2 }
  0x29   :  { %465 = shalt.err (!%p462_p4)
}
  0x2a   :  { %s466_s8 = scalar_lea.vmem %s48_s23, 2048  ;;  %p471_p6 = scmp.lt.s32.totalorder %s48_s23, %s48_s23 }
  0x2b   :  { %p467_p5 = scmp.ne.s32.totalorder %s48_s23, %s466_s8  ;;  %p472_p7 = scmp.lt.s32.totalorder %s466_s8, %s466_s8 }
  0x2d   :  { %p473_p8 = por %p472_p7, %p471_p6 }
  0x2f   :  { %p474_p9 = pnand %p473_p8, %p467_p5 }
  0x31   :  { %477 = shalt.err (!%p474_p9)
}
  0x32   :  { %53 = dma.hbm_to_vmem [thread:$0]  %s629_s4, 2048, %s48_s23, [#allocation6], %s508_s9, %s508_s9, %s509_s10  }
  0x33   :  { %500 = dma.done.wait [#allocation3], 256  }
  0x34   :  { %501 = vsyncadd [#allocation3], 4294967040 }
  0x35   :  { %502 = dma.done.wait [#allocation6], 2560  }
  0x36   :  { %503 = vsyncadd [#allocation6], 4294964736  ;;  %vm71_vm0 = vcmask 261120   ;;  %v67_v0 = vld [vmem:[#allocation5] sm:$0xff]  ;;  %v68_v1 = vld [vmem:[#allocation5 + $0x8] sm:$0xff]  ;;  %s511_s16 = smov [#allocation8]  }
  0x37   :  { %v69_v2 = vld [vmem:[#allocation5 + $0x10] sm:$0xff]  ;;  %v366_v3 = vpack.c.bf16 %v68_v1, %v67_v0  ;;  %v70_v4 = vld [vmem:[#allocation5 + $0x18] sm:$0xff]  ;;  %v173_v7 = vld [vmem:[#allocation7] sm:$0xff] }
  0x38   :  { %v65_v5 = vld [vmem:[#allocation2] sm:$0xff]  ;;  %v370_v6 = vpack.c.bf16 %v70_v4, %v69_v2  ;;  %v174_v8 = vld [vmem:[#allocation7 + $0x8] sm:$0xff]  ;;  %v176_v11 = vld [vmem:[#allocation7 + $0x18] sm:$0xff] }
  0x39   :  { %328 = vmatprep.mubr.msk.f32.mxu0 %vm71_vm0, %v65_v5  ;;  %v175_v9 = vld [vmem:[#allocation7 + $0x10] sm:$0xff]  ;;  %367 = vmatprep.subr.bf16.mxu0 %v366_v3  ;;  %v374_v10 = vpack.c.bf16 %v174_v8, %v173_v7  ;;  %v177_v13 = vld [vmem:[#allocation7 + $0x20] sm:$0xff]  ;;  %v178_v14 = vld [vmem:[#allocation7 + $0x28] sm:$0xff] }
  0x3a   :  { %369 = vmatpush3.bf16.msra.mxu0 %v366_v3  ;;  %v378_v12 = vpack.c.bf16 %v176_v11, %v175_v9  ;;  %v382_v15 = vpack.c.bf16 %v178_v14, %v177_v13  ;;  %v66_v16 = vld [vmem:[#allocation2 + $0x8] sm:$0xff]  ;;  %v179_v17 = vld [vmem:[#allocation7 + $0x30] sm:$0xff]  ;;  %v181_v20 = vld [vmem:[#allocation7 + $0x40] sm:$0xff] }
  0x3b   :  { %371 = vmatprep.subr.bf16.mxu0 %v370_v6  ;;  %375 = vmatprep.subr.bf16.mxu1 %v374_v10  ;;  %v180_v18 = vld [vmem:[#allocation7 + $0x38] sm:$0xff]  ;;  %v182_v21 = vld [vmem:[#allocation7 + $0x48] sm:$0xff]  ;;  %v183_v23 = vld [vmem:[#allocation7 + $0x50] sm:$0xff] }
  0x3c   :  { %377 = vmatpush3.bf16.msra.mxu1 %v374_v10  ;;  %v386_v19 = vpack.c.bf16 %v180_v18, %v179_v17  ;;  %v390_v22 = vpack.c.bf16 %v182_v21, %v181_v20  ;;  %v184_v24 = vld [vmem:[#allocation7 + $0x58] sm:$0xff]  ;;  %v185_v26 = vld [vmem:[#allocation7 + $0x60] sm:$0xff]  ;;  %v186_v27 = vld [vmem:[#allocation7 + $0x68] sm:$0xff] }
  0x3d   :  { %379 = vmatprep.subr.bf16.mxu1 %v378_v12  ;;  %v394_v25 = vpack.c.bf16 %v184_v24, %v183_v23  ;;  %v398_v28 = vpack.c.bf16 %v186_v27, %v185_v26  ;;  %v187_v29 = vld [vmem:[#allocation7 + $0x70] sm:$0xff]  ;;  %v188_v30 = vld [vmem:[#allocation7 + $0x78] sm:$0xff] }
  0x3e   :  { %373 = vmatpush3.bf16.msra.mxu0 %v370_v6  ;;  %v402_v31 = vpack.c.bf16 %v188_v30, %v187_v29  ;;  %v293_v32 = vld [vmem:[%s627_s2] ss:$0 sm:$0xff]  ;;  %s278_s2 = sshll.u32 %s511_s16, 4  ;;  %s279_s2 = int_to_ptr.vmem [resolvable:$true] %s278_s2 }
  0x3f   :  { %v294_v34 = vld [vmem:[%s628_s3] ss:$0 sm:$0xff]  ;;  %s478_s3 = scalar_lea.vmem %s279_s2, 256  ;;  %p483_p11 = scmp.lt.s32.totalorder %s279_s2, %s279_s2 }
  0x40   :  { %381 = vmatpush3.bf16.msra.mxu1 %v378_v12  ;;  %v295_v42 = vld [vmem:[%s630_s5] ss:$0 sm:$0xff]  ;;  %p479_p10 = scmp.ne.s32.totalorder %s279_s2, %s478_s3  ;;  %p484_p12 = scmp.lt.s32.totalorder %s478_s3, %s478_s3 }
  0x41   :  { %329 = vmatmul.mubr.msk.f32.vlgmr.msra.gmra.mrb[0].mxu0 %vm71_vm0, %v66_v16  ;;  %383 = vmatprep.subr.bf16.mxu1 %v382_v15 }
  0x42   :  { %p485_p13 = por %p484_p12, %p483_p11 }
  0x44   :  { %385 = vmatpush3.bf16.msra.mxu1 %v382_v15  ;;  %p486_p0 = pnand %p485_p13, %p479_p10 }
  0x45   :  { %387 = vmatprep.subr.bf16.mxu1 %v386_v19 }
  0x48   :  { %389 = vmatpush3.bf16.msra.mxu1 %v386_v19 }
  0x49   :  { %391 = vmatprep.subr.bf16.mxu1 %v390_v22 }
  0x4c   :  { %393 = vmatpush3.bf16.msra.mxu1 %v390_v22 }
  0x4d   :  { %395 = vmatprep.subr.bf16.mxu1 %v394_v25 }
  0x50   :  { %397 = vmatpush3.bf16.msra.mxu1 %v394_v25 }
  0x51   :  { %399 = vmatprep.subr.bf16.mxu1 %v398_v28 }
  0x54   :  { %401 = vmatpush3.bf16.msra.mxu1 %v398_v28 }
  0x55   :  { %403 = vmatprep.subr.bf16.mxu1 %v402_v31 }
  0x58   :  { %405 = vmatpush3.bf16.msra.mxu1 %v402_v31 }
 0x114   :  { %v330_v33 = vpop.f32.mrb[0].mxu0 }
 0x115   :  { %v161_v35 = vmul.f32 %v330_v33, %v293_v32  ;;  %v144_v36 = vpop.f32.mrb[1].mxu0 }
 0x116   :  { %v160_v37 = vmul.f32 %v293_v32, %v144_v36 }
 0x117   :  { %v170_v38 = vadd.f32 %v294_v34, %v161_v35 }
 0x118   :  { %v169_v39 = vadd.f32 %v294_v34, %v160_v37 }
 0x119   :  { %v172_v41 = vmax.f32 %v170_v38, 0.0 }
 0x11a   :  { %v171_v40 = vmax.f32 %v169_v39, 0.0 }
 0x11c   :  { %363 = vmatprep.mubr.f32.mxu1 %v171_v40 }
 0x11d   :  { %364 = vmatmul.mubr.f32.vlgmr.msra.gmra.mrb[0].mxu1 %v172_v41 }
 0x1f0   :  { %v365_v43 = vpop.f32.mrb[0].mxu1 }
 0x1f1   :  { %v268_v44 = vadd.f32 %v365_v43, %v295_v42  ;;  %v262_v45 = vpop.f32.mrb[1].mxu1 }
 0x1f2   :  { %v263_v46 = vadd.f32 %v295_v42, %v262_v45 }
 0x1f3   :  { %272 = vst [vmem:[#allocation8 + $0x8] sm:$0xff] %v268_v44 }
 0x1f4   :  { %271 = vst [vmem:[#allocation8] sm:$0xff] %v263_v46 }
 0x1f5   :  { %489 = shalt.err (!%p486_p0)
}
 0x1f6   :  { %s490_s5 = scalar_lea.hbm %s631_s6, 256 }
 0x1f7   :  { %p491_p1 = scmp.ne.s32.totalorder %s631_s6, %s490_s5  ;;  %p494_p2 = scmp.lt.u32.totalorder %s490_s5, %s631_s6 }
 0x1f9   :  { %p496_p3 = pnand %p494_p2, %p491_p1 }
 0x1fb   :  { %499 = shalt.err (!%p496_p3)
}
 0x1fc   :  { %284 = dma.vmem_to_hbm [thread:$0]  %s279_s2, 256, %s631_s6, [#allocation4], %s508_s9, %s508_s9, %s509_s10  }
 0x1fd   :  { %504 = dma.done.wait [#allocation4], 256  }
 0x1fe   :  { %505 = vsyncadd [#allocation4], 4294967040 }
 0x1ff   :  { %288 = vsyncpa [#allocation3], 1 }
 0x200   :  { %289 = vsyncpa [#allocation6], 1 }
 0x201   :  { %290 = vsyncpa [#allocation4], 1 }

</bundles_post_ra>
